<compile_context>
chip_gen: v7x
topology: tpu7x:2x2x1
jax: 0.10.0
libtpu: 0.0.40
codegen_flags: <defaults>
</compile_context>

<pallas_src>
import functools

import jax
import jax.numpy as jnp
from jax import lax
from jax.experimental import pallas as pl
from jax.experimental.pallas import tpu as pltpu


def _attention_kernel(*refs, scale, num_heads, head_dim, write_attn,
                      use_mask, compute_dtype):
    """One batch element per grid step; static loop over heads.

    Ref order: x, [maskadd,] wqkv, wproj, bproj, out, [attn,] ctx_scratch
      x_ref:       (1, N, C)
      maskadd_ref: (1, 1, N)   f32 additive mask ({0, -1e30}), optional
      wqkv_ref:    (C, 3C)     resident (constant index_map)
      wproj_ref:   (C, C)      resident
      bproj_ref:   (1, C)      resident
      out_ref:     (1, N, C)
      attn_ref:    (1, H, N, N)   only when write_attn
      ctx_ref:     (N, C)      VMEM scratch (compute dtype)
    """
    idx = 0
    x_ref = refs[idx]; idx += 1
    if use_mask:
        maskadd_ref = refs[idx]; idx += 1
    wqkv_ref = refs[idx]; idx += 1
    wproj_ref = refs[idx]; idx += 1
    bproj_ref = refs[idx]; idx += 1
    out_ref = refs[idx]; idx += 1
    if write_attn:
        attn_ref = refs[idx]; idx += 1
    ctx_ref = refs[idx]; idx += 1

    C = num_heads * head_dim
    cdt = compute_dtype

    x = x_ref[0]                                              # (N, C)

    # Fused QKV projection: one full-width MXU matmul (f32 accumulation).
    qkv = jnp.dot(x.astype(cdt), wqkv_ref[...].astype(cdt),
                  preferred_element_type=jnp.float32)         # (N, 3C) f32

    if use_mask:
        maskadd = maskadd_ref[0]                              # (1, N) f32

    for h in range(num_heads):                                # static unroll
        lo = h * head_dim
        hi = lo + head_dim
        q = qkv[:, lo:hi] * jnp.float32(scale)                # (N, hd) f32
        k = qkv[:, C + lo:C + hi]                             # (N, hd) f32
        v = qkv[:, 2 * C + lo:2 * C + hi]                     # (N, hd) f32

        # Scores without an explicit transpose: contract shared last axis.
        s = lax.dot_general(q.astype(cdt), k.astype(cdt),
                            (((1,), (1,)), ((), ())),
                            preferred_element_type=jnp.float32)   # (N, N)
        if use_mask:
            s = s + maskadd

        # Numerically-stable softmax; divide goes to the EUP (approx recip).
        s_max = jnp.max(s, axis=-1, keepdims=True)
        p = jnp.exp(s - s_max)
        denom = jnp.sum(p, axis=-1, keepdims=True)
        p = p * pl.reciprocal(denom, approx=True)             # (N, N) f32

        if write_attn:
            attn_ref[0, h] = p.astype(attn_ref.dtype)

        # Per-head context -> h-th static column slice of the ctx scratch.
        ctx = jnp.dot(p.astype(cdt), v.astype(cdt),
                      preferred_element_type=jnp.float32)     # (N, hd)
        ctx_ref[:, lo:hi] = ctx.astype(ctx_ref.dtype)

    # Single full-depth output projection (+bias).
    out = jnp.dot(ctx_ref[...].astype(cdt), wproj_ref[...].astype(cdt),
                  preferred_element_type=jnp.float32)
    out = out + bproj_ref[...].astype(jnp.float32)
    out_ref[0] = out.astype(out_ref.dtype)


def attention_forward(x, wqkv, wproj, bproj, *, num_heads, mask=None,
                      with_cls=False, return_attn=False,
                      attn_dtype=jnp.bfloat16, compute_dtype=None):
    """Pallas-backed equivalent of Attention.forward(x, mask=mask).

    Returns (out, attn): out is (B, N, C); attn is (B, H, N, N) when
    return_attn=True, else None (skips the dominant HBM writeback).
    """
    B, N, C = x.shape
    head_dim = C // num_heads
    scale = head_dim ** (-0.5)
    cdt = jnp.dtype(compute_dtype) if compute_dtype is not None \
        else jnp.dtype(x.dtype)
    use_mask = mask is not None

    inputs = [x]
    in_specs = [pl.BlockSpec((1, N, C), lambda b: (b, 0, 0))]

    if use_mask:
        if with_cls:
            mask = jnp.pad(mask, ((0, 0), (1, 0)))  # F.pad(mask, (1, 0))
        # Precompute additive mask once in the wrapper ({0, -1e30}).
        maskadd = jnp.where(mask.astype(jnp.float32) > 0.5,
                            jnp.float32(-1e30),
                            jnp.float32(0.0)).reshape(B, 1, N)
        inputs.append(maskadd)
        in_specs.append(pl.BlockSpec((1, 1, N), lambda b: (b, 0, 0)))

    bproj2 = bproj.reshape(1, C)
    inputs += [wqkv, wproj, bproj2]
    in_specs += [
        pl.BlockSpec((C, 3 * C), lambda b: (0, 0)),   # resident W_qkv
        pl.BlockSpec((C, C), lambda b: (0, 0)),       # resident W_proj
        pl.BlockSpec((1, C), lambda b: (0, 0)),       # resident bias
    ]

    out_shapes = [jax.ShapeDtypeStruct((B, N, C), x.dtype)]
    out_specs = [pl.BlockSpec((1, N, C), lambda b: (b, 0, 0))]
    if return_attn:
        out_shapes.append(
            jax.ShapeDtypeStruct((B, num_heads, N, N), attn_dtype))
        out_specs.append(
            pl.BlockSpec((1, num_heads, N, N), lambda b: (b, 0, 0, 0)))

    kernel = functools.partial(
        _attention_kernel, scale=scale, num_heads=num_heads,
        head_dim=head_dim, write_attn=return_attn, use_mask=use_mask,
        compute_dtype=cdt)

    # --- VMEM budget: blocks (double-buffered) + resident weights +
    #     ctx scratch + (N,N)/(N,3C) temporaries, generation-aware cap. ---
    xsz = jnp.dtype(x.dtype).itemsize
    wsz = jnp.dtype(wqkv.dtype).itemsize
    f32 = 4
    need = 2 * (N * C * xsz)                      # x blocks
    need += 2 * (N * C * xsz)                     # out blocks
    if use_mask:
        need += 2 * (N * f32)
    if return_attn:
        need += 2 * (num_heads * N * N * jnp.dtype(attn_dtype).itemsize)
    need += (3 * C * C + C * C + C) * wsz         # resident weights (once)
    need += N * C * cdt.itemsize                  # ctx scratch
    need += (N * 3 * C * f32                      # qkv temporary
             + 2 * N * N * f32                    # scores + probs (one head)
             + 4 * N * head_dim * f32             # q/k/v/ctx temporaries
             + N * C * f32)                       # f32 out before cast
    need += 2 << 20                               # slack
    try:
        phys = int(getattr(pltpu.get_tpu_info(), "vmem_capacity_bytes",
                           128 << 20))
    except Exception:  # pragma: no cover - conservative fallback off-TPU
        phys = 128 << 20
    cap = (phys * 3) // 4                         # headroom for Mosaic scratch
    vmem_limit = int(min(cap, max(32 << 20, need)))

    results = pl.pallas_call(
        kernel,
        out_shape=tuple(out_shapes),
        grid_spec=pltpu.PrefetchScalarGridSpec(
            num_scalar_prefetch=0,
            grid=(B,),
            in_specs=in_specs,
            out_specs=out_specs,
            scratch_shapes=[pltpu.VMEM((N, C), cdt)],   # per-batch ctx slab
        ),
        compiler_params=pltpu.CompilerParams(
            dimension_semantics=("parallel",),
            vmem_limit_bytes=vmem_limit),
    )(*inputs)

    if return_attn:
        return results[0], results[1]
    return results[0], None


def _reference_attention(x, wqkv, wproj, bproj, *, num_heads, mask=None):
    """Pure-JAX mirror of the PyTorch forward."""
    B, N, C = x.shape
    hd = C // num_heads
    scale = hd ** (-0.5)
    qkv = (x @ wqkv).reshape(B, N, 3, num_heads, hd).transpose(2, 0, 3, 1, 4)
    q, k, v = qkv[0], qkv[1], qkv[2]                  # (B, H, N, hd)
    scores = jnp.einsum("bhqd,bhkd->bhqk", q, k) * scale
    if mask is not None:
        scores = jnp.where(mask.reshape(B, 1, 1, N) == 1, -jnp.inf, scores)
    attn = jax.nn.softmax(scores, axis=-1)
    ctx = jnp.einsum("bhqk,bhkd->bhqd", attn, v)      # (B, H, N, hd)
    ctx = ctx.transpose(0, 2, 1, 3).reshape(B, N, C)
    out = ctx @ wproj + bproj
    return out, attn


if __name__ == "__main__":
    B, N, C = 2, 16, 64
    NUM_HEADS = 4

    key = jax.random.PRNGKey(0)
    kx, kqkv, kw, kb = jax.random.split(key, 4)

    x = jax.random.normal(kx, (B, N, C), dtype=jnp.float32)
    wqkv = jax.random.normal(kqkv, (C, 3 * C), dtype=jnp.float32) * 0.02
    wproj = jax.random.normal(kw, (C, C), dtype=jnp.float32) * 0.02
    bproj = jax.random.normal(kb, (C,), dtype=jnp.float32) * 0.02

    ref_out, ref_attn = _reference_attention(x, wqkv, wproj, bproj,
                                             num_heads=NUM_HEADS)

    # --- unmasked path, attn returned (f32 for exact comparison) ---
    out, attn = attention_forward(x, wqkv, wproj, bproj, num_heads=NUM_HEADS,
                                  return_attn=True, attn_dtype=jnp.float32)
    out = jax.block_until_ready(out)
    attn = jax.block_until_ready(attn)
    assert out.shape == (B, N, C) and attn.shape == (B, NUM_HEADS, N, N)
    assert jnp.allclose(out, ref_out, atol=2e-3, rtol=2e-3)
    assert jnp.allclose(attn, ref_attn, atol=2e-3, rtol=2e-3)

    # --- masked path (last three keys masked for every batch element) ---
    mask = jnp.zeros((B, N), dtype=jnp.float32).at[:, -3:].set(1.0)
    out_m, attn_m = attention_forward(x, wqkv, wproj, bproj,
                                      num_heads=NUM_HEADS, mask=mask,
                                      return_attn=True,
                                      attn_dtype=jnp.float32)
    out_m = jax.block_until_ready(out_m)
    attn_m = jax.block_until_ready(attn_m)
    ref_out_m, ref_attn_m = _reference_attention(x, wqkv, wproj, bproj,
                                                 num_heads=NUM_HEADS,
                                                 mask=mask)
    assert jnp.allclose(out_m, ref_out_m, atol=2e-3, rtol=2e-3)
    assert jnp.allclose(attn_m, ref_attn_m, atol=2e-3, rtol=2e-3)

    # --- production path: no attention writeback at all ---
    out_fast, attn_none = attention_forward(x, wqkv, wproj, bproj,
                                            num_heads=NUM_HEADS,
                                            return_attn=False)
    out_fast = jax.block_until_ready(out_fast)
    assert attn_none is None
    assert jnp.allclose(out_fast, ref_out, atol=2e-3, rtol=2e-3)

    print("KERNEL_OK")
</pallas_src>

<mosaic_0001>
module attributes {stable_mosaic.version = 11 : i64} {
  func.func @_attention_kernel(%arg0: i32, %arg1: memref<1x16x64xf32, #tpu.memory_space<vmem>>, %arg2: memref<64x192xf32, #tpu.memory_space<vmem>>, %arg3: memref<64x64xf32, #tpu.memory_space<vmem>>, %arg4: memref<1x64xf32, #tpu.memory_space<vmem>>, %arg5: memref<1x16x64xf32, #tpu.memory_space<vmem>>, %arg6: memref<1x4x16x16xf32, #tpu.memory_space<vmem>>, %arg7: memref<16x64xf32, #tpu.memory_space<vmem>>) attributes {dimension_semantics = [#tpu.dimension_semantics<parallel>], iteration_bounds = array<i64: 2>, scalar_prefetch = 0 : i64, scratch_operands = 1 : i64, tpu.core_type = #tpu.core_type<tc>, window_params = [{transform_indices = @transform_0, window_bounds = array<i64: 1, 16, 64>}, {pipeline_mode = #tpu.pipeline_mode<synchronous>, transform_indices = @transform_1, window_bounds = array<i64: 64, 192>}, {pipeline_mode = #tpu.pipeline_mode<synchronous>, transform_indices = @transform_2, window_bounds = array<i64: 64, 64>}, {pipeline_mode = #tpu.pipeline_mode<synchronous>, transform_indices = @transform_3, window_bounds = array<i64: 1, 64>}, {transform_indices = @transform_4, window_bounds = array<i64: 1, 16, 64>}, {transform_indices = @transform_5, window_bounds = array<i64: 1, 4, 16, 16>}]} {
    %c0 = arith.constant 0 : index
    %c0_0 = arith.constant 0 : index
    %c0_1 = arith.constant 0 : index
    %0 = vector.load %arg1[%c0, %c0_0, %c0_1] : memref<1x16x64xf32, #tpu.memory_space<vmem>>, vector<1x16x64xf32>
    %1 = vector.shape_cast %0 : vector<1x16x64xf32> to vector<16x64xf32>
    %c0_2 = arith.constant 0 : index
    %c0_3 = arith.constant 0 : index
    %2 = vector.load %arg2[%c0_2, %c0_3] : memref<64x192xf32, #tpu.memory_space<vmem>>, vector<64x192xf32>
    %cst = arith.constant dense<0.000000e+00> : vector<16x192xf32>
    %3 = tpu.matmul %1, %2, %cst {dimension_numbers = #tpu.dot_dimension_numbers<[1], [0], [0], [1], [0, 0, 1, 1], [], []>} : vector<16x64xf32>, vector<64x192xf32>, vector<16x192xf32> -> vector<16x192xf32>
    %4 = vector.extract_strided_slice %3 {offsets = [0, 0], sizes = [16, 16], strides = [1, 1]} : vector<16x192xf32> to vector<16x16xf32>
    %cst_4 = arith.constant 2.500000e-01 : f32
    %5 = vector.broadcast %cst_4 : f32 to vector<16x16xf32>
    %6 = arith.mulf %4, %5 : vector<16x16xf32>
    %7 = vector.extract_strided_slice %3 {offsets = [0, 64], sizes = [16, 16], strides = [1, 1]} : vector<16x192xf32> to vector<16x16xf32>
    %8 = vector.extract_strided_slice %3 {offsets = [0, 128], sizes = [16, 16], strides = [1, 1]} : vector<16x192xf32> to vector<16x16xf32>
    %cst_5 = arith.constant dense<0.000000e+00> : vector<16x16xf32>
    %9 = tpu.matmul %6, %7, %cst_5 {dimension_numbers = #tpu.dot_dimension_numbers<[1], [1], [0], [0], [0, 0, 1, 0], [], []>} : vector<16x16xf32>, vector<16x16xf32>, vector<16x16xf32> -> vector<16x16xf32>
    %cst_6 = arith.constant dense<0xFF800000> : vector<16xf32>
    %10 = vector.multi_reduction <maximumf>, %9, %cst_6 [1] : vector<16x16xf32> to vector<16xf32>
    %11 = vector.shape_cast %10 : vector<16xf32> to vector<16x1xf32>
    %12 = vector.broadcast %11 : vector<16x1xf32> to vector<16x16xf32>
    %13 = arith.subf %9, %12 : vector<16x16xf32>
    %14 = math.exp %13 : vector<16x16xf32>
    %cst_7 = arith.constant dense<0.000000e+00> : vector<16xf32>
    %15 = vector.multi_reduction <add>, %14, %cst_7 [1] : vector<16x16xf32> to vector<16xf32>
    %16 = vector.shape_cast %15 : vector<16xf32> to vector<16x1xf32>
    %17 = tpu.reciprocal %16 {approx = true} : vector<16x1xf32> -> vector<16x1xf32>
    %18 = vector.broadcast %17 : vector<16x1xf32> to vector<16x16xf32>
    %19 = arith.mulf %14, %18 : vector<16x16xf32>
    %c0_8 = arith.constant 0 : index
    %c0_9 = arith.constant 0 : index
    %c0_10 = arith.constant 0 : index
    %c0_11 = arith.constant 0 : index
    %20 = vector.load %arg6[%c0_8, %c0_9, %c0_10, %c0_11] : memref<1x4x16x16xf32, #tpu.memory_space<vmem>>, vector<1x1x16x16xf32>
    %21 = vector.shape_cast %20 : vector<1x1x16x16xf32> to vector<16x16xf32>
    %22 = vector.shape_cast %19 : vector<16x16xf32> to vector<1x1x16x16xf32>
    tpu.vector_store %arg6[%c0_8, %c0_9, %c0_10, %c0_11], %22 {strides = array<i32>} : memref<1x4x16x16xf32, #tpu.memory_space<vmem>>, vector<1x1x16x16xf32>,
    %cst_12 = arith.constant dense<0.000000e+00> : vector<16x16xf32>
    %23 = tpu.matmul %19, %8, %cst_12 {dimension_numbers = #tpu.dot_dimension_numbers<[1], [0], [0], [1], [0, 0, 1, 1], [], []>} : vector<16x16xf32>, vector<16x16xf32>, vector<16x16xf32> -> vector<16x16xf32>
    %c0_13 = arith.constant 0 : index
    %c0_14 = arith.constant 0 : index
    %24 = vector.load %arg7[%c0_13, %c0_14] : memref<16x64xf32, #tpu.memory_space<vmem>>, vector<16x16xf32>
    tpu.vector_store %arg7[%c0_13, %c0_14], %23 {strides = array<i32>} : memref<16x64xf32, #tpu.memory_space<vmem>>, vector<16x16xf32>,
    %25 = vector.extract_strided_slice %3 {offsets = [0, 16], sizes = [16, 16], strides = [1, 1]} : vector<16x192xf32> to vector<16x16xf32>
    %cst_15 = arith.constant 2.500000e-01 : f32
    %26 = vector.broadcast %cst_15 : f32 to vector<16x16xf32>
    %27 = arith.mulf %25, %26 : vector<16x16xf32>
    %28 = vector.extract_strided_slice %3 {offsets = [0, 80], sizes = [16, 16], strides = [1, 1]} : vector<16x192xf32> to vector<16x16xf32>
    %29 = vector.extract_strided_slice %3 {offsets = [0, 144], sizes = [16, 16], strides = [1, 1]} : vector<16x192xf32> to vector<16x16xf32>
    %cst_16 = arith.constant dense<0.000000e+00> : vector<16x16xf32>
    %30 = tpu.matmul %27, %28, %cst_16 {dimension_numbers = #tpu.dot_dimension_numbers<[1], [1], [0], [0], [0, 0, 1, 0], [], []>} : vector<16x16xf32>, vector<16x16xf32>, vector<16x16xf32> -> vector<16x16xf32>
    %cst_17 = arith.constant dense<0xFF800000> : vector<16xf32>
    %31 = vector.multi_reduction <maximumf>, %30, %cst_17 [1] : vector<16x16xf32> to vector<16xf32>
    %32 = vector.shape_cast %31 : vector<16xf32> to vector<16x1xf32>
    %33 = vector.broadcast %32 : vector<16x1xf32> to vector<16x16xf32>
    %34 = arith.subf %30, %33 : vector<16x16xf32>
    %35 = math.exp %34 : vector<16x16xf32>
    %cst_18 = arith.constant dense<0.000000e+00> : vector<16xf32>
    %36 = vector.multi_reduction <add>, %35, %cst_18 [1] : vector<16x16xf32> to vector<16xf32>
    %37 = vector.shape_cast %36 : vector<16xf32> to vector<16x1xf32>
    %38 = tpu.reciprocal %37 {approx = true} : vector<16x1xf32> -> vector<16x1xf32>
    %39 = vector.broadcast %38 : vector<16x1xf32> to vector<16x16xf32>
    %40 = arith.mulf %35, %39 : vector<16x16xf32>
    %c0_19 = arith.constant 0 : index
    %c1 = arith.constant 1 : index
    %c0_20 = arith.constant 0 : index
    %c0_21 = arith.constant 0 : index
    %41 = vector.load %arg6[%c0_19, %c1, %c0_20, %c0_21] : memref<1x4x16x16xf32, #tpu.memory_space<vmem>>, vector<1x1x16x16xf32>
    %42 = vector.shape_cast %41 : vector<1x1x16x16xf32> to vector<16x16xf32>
    %43 = vector.shape_cast %40 : vector<16x16xf32> to vector<1x1x16x16xf32>
    tpu.vector_store %arg6[%c0_19, %c1, %c0_20, %c0_21], %43 {strides = array<i32>} : memref<1x4x16x16xf32, #tpu.memory_space<vmem>>, vector<1x1x16x16xf32>,
    %cst_22 = arith.constant dense<0.000000e+00> : vector<16x16xf32>
    %44 = tpu.matmul %40, %29, %cst_22 {dimension_numbers = #tpu.dot_dimension_numbers<[1], [0], [0], [1], [0, 0, 1, 1], [], []>} : vector<16x16xf32>, vector<16x16xf32>, vector<16x16xf32> -> vector<16x16xf32>
    %c0_23 = arith.constant 0 : index
    %c16 = arith.constant 16 : index
    %45 = vector.load %arg7[%c0_23, %c16] : memref<16x64xf32, #tpu.memory_space<vmem>>, vector<16x16xf32>
    tpu.vector_store %arg7[%c0_23, %c16], %44 {strides = array<i32>} : memref<16x64xf32, #tpu.memory_space<vmem>>, vector<16x16xf32>,
    %46 = vector.extract_strided_slice %3 {offsets = [0, 32], sizes = [16, 16], strides = [1, 1]} : vector<16x192xf32> to vector<16x16xf32>
    %cst_24 = arith.constant 2.500000e-01 : f32
    %47 = vector.broadcast %cst_24 : f32 to vector<16x16xf32>
    %48 = arith.mulf %46, %47 : vector<16x16xf32>
    %49 = vector.extract_strided_slice %3 {offsets = [0, 96], sizes = [16, 16], strides = [1, 1]} : vector<16x192xf32> to vector<16x16xf32>
    %50 = vector.extract_strided_slice %3 {offsets = [0, 160], sizes = [16, 16], strides = [1, 1]} : vector<16x192xf32> to vector<16x16xf32>
    %cst_25 = arith.constant dense<0.000000e+00> : vector<16x16xf32>
    %51 = tpu.matmul %48, %49, %cst_25 {dimension_numbers = #tpu.dot_dimension_numbers<[1], [1], [0], [0], [0, 0, 1, 0], [], []>} : vector<16x16xf32>, vector<16x16xf32>, vector<16x16xf32> -> vector<16x16xf32>
    %cst_26 = arith.constant dense<0xFF800000> : vector<16xf32>
    %52 = vector.multi_reduction <maximumf>, %51, %cst_26 [1] : vector<16x16xf32> to vector<16xf32>
    %53 = vector.shape_cast %52 : vector<16xf32> to vector<16x1xf32>
    %54 = vector.broadcast %53 : vector<16x1xf32> to vector<16x16xf32>
    %55 = arith.subf %51, %54 : vector<16x16xf32>
    %56 = math.exp %55 : vector<16x16xf32>
    %cst_27 = arith.constant dense<0.000000e+00> : vector<16xf32>
    %57 = vector.multi_reduction <add>, %56, %cst_27 [1] : vector<16x16xf32> to vector<16xf32>
    %58 = vector.shape_cast %57 : vector<16xf32> to vector<16x1xf32>
    %59 = tpu.reciprocal %58 {approx = true} : vector<16x1xf32> -> vector<16x1xf32>
    %60 = vector.broadcast %59 : vector<16x1xf32> to vector<16x16xf32>
    %61 = arith.mulf %56, %60 : vector<16x16xf32>
    %c0_28 = arith.constant 0 : index
    %c2 = arith.constant 2 : index
    %c0_29 = arith.constant 0 : index
    %c0_30 = arith.constant 0 : index
    %62 = vector.load %arg6[%c0_28, %c2, %c0_29, %c0_30] : memref<1x4x16x16xf32, #tpu.memory_space<vmem>>, vector<1x1x16x16xf32>
    %63 = vector.shape_cast %62 : vector<1x1x16x16xf32> to vector<16x16xf32>
    %64 = vector.shape_cast %61 : vector<16x16xf32> to vector<1x1x16x16xf32>
    tpu.vector_store %arg6[%c0_28, %c2, %c0_29, %c0_30], %64 {strides = array<i32>} : memref<1x4x16x16xf32, #tpu.memory_space<vmem>>, vector<1x1x16x16xf32>,
    %cst_31 = arith.constant dense<0.000000e+00> : vector<16x16xf32>
    %65 = tpu.matmul %61, %50, %cst_31 {dimension_numbers = #tpu.dot_dimension_numbers<[1], [0], [0], [1], [0, 0, 1, 1], [], []>} : vector<16x16xf32>, vector<16x16xf32>, vector<16x16xf32> -> vector<16x16xf32>
    %c0_32 = arith.constant 0 : index
    %c32 = arith.constant 32 : index
    %66 = vector.load %arg7[%c0_32, %c32] : memref<16x64xf32, #tpu.memory_space<vmem>>, vector<16x16xf32>
    tpu.vector_store %arg7[%c0_32, %c32], %65 {strides = array<i32>} : memref<16x64xf32, #tpu.memory_space<vmem>>, vector<16x16xf32>,
    %67 = vector.extract_strided_slice %3 {offsets = [0, 48], sizes = [16, 16], strides = [1, 1]} : vector<16x192xf32> to vector<16x16xf32>
    %cst_33 = arith.constant 2.500000e-01 : f32
    %68 = vector.broadcast %cst_33 : f32 to vector<16x16xf32>
    %69 = arith.mulf %67, %68 : vector<16x16xf32>
    %70 = vector.extract_strided_slice %3 {offsets = [0, 112], sizes = [16, 16], strides = [1, 1]} : vector<16x192xf32> to vector<16x16xf32>
    %71 = vector.extract_strided_slice %3 {offsets = [0, 176], sizes = [16, 16], strides = [1, 1]} : vector<16x192xf32> to vector<16x16xf32>
    %cst_34 = arith.constant dense<0.000000e+00> : vector<16x16xf32>
    %72 = tpu.matmul %69, %70, %cst_34 {dimension_numbers = #tpu.dot_dimension_numbers<[1], [1], [0], [0], [0, 0, 1, 0], [], []>} : vector<16x16xf32>, vector<16x16xf32>, vector<16x16xf32> -> vector<16x16xf32>
    %cst_35 = arith.constant dense<0xFF800000> : vector<16xf32>
    %73 = vector.multi_reduction <maximumf>, %72, %cst_35 [1] : vector<16x16xf32> to vector<16xf32>
    %74 = vector.shape_cast %73 : vector<16xf32> to vector<16x1xf32>
    %75 = vector.broadcast %74 : vector<16x1xf32> to vector<16x16xf32>
    %76 = arith.subf %72, %75 : vector<16x16xf32>
    %77 = math.exp %76 : vector<16x16xf32>
    %cst_36 = arith.constant dense<0.000000e+00> : vector<16xf32>
    %78 = vector.multi_reduction <add>, %77, %cst_36 [1] : vector<16x16xf32> to vector<16xf32>
    %79 = vector.shape_cast %78 : vector<16xf32> to vector<16x1xf32>
    %80 = tpu.reciprocal %79 {approx = true} : vector<16x1xf32> -> vector<16x1xf32>
    %81 = vector.broadcast %80 : vector<16x1xf32> to vector<16x16xf32>
    %82 = arith.mulf %77, %81 : vector<16x16xf32>
    %c0_37 = arith.constant 0 : index
    %c3 = arith.constant 3 : index
    %c0_38 = arith.constant 0 : index
    %c0_39 = arith.constant 0 : index
    %83 = vector.load %arg6[%c0_37, %c3, %c0_38, %c0_39] : memref<1x4x16x16xf32, #tpu.memory_space<vmem>>, vector<1x1x16x16xf32>
    %84 = vector.shape_cast %83 : vector<1x1x16x16xf32> to vector<16x16xf32>
    %85 = vector.shape_cast %82 : vector<16x16xf32> to vector<1x1x16x16xf32>
    tpu.vector_store %arg6[%c0_37, %c3, %c0_38, %c0_39], %85 {strides = array<i32>} : memref<1x4x16x16xf32, #tpu.memory_space<vmem>>, vector<1x1x16x16xf32>,
    %cst_40 = arith.constant dense<0.000000e+00> : vector<16x16xf32>
    %86 = tpu.matmul %82, %71, %cst_40 {dimension_numbers = #tpu.dot_dimension_numbers<[1], [0], [0], [1], [0, 0, 1, 1], [], []>} : vector<16x16xf32>, vector<16x16xf32>, vector<16x16xf32> -> vector<16x16xf32>
    %c0_41 = arith.constant 0 : index
    %c48 = arith.constant 48 : index
    %87 = vector.load %arg7[%c0_41, %c48] : memref<16x64xf32, #tpu.memory_space<vmem>>, vector<16x16xf32>
    tpu.vector_store %arg7[%c0_41, %c48], %86 {strides = array<i32>} : memref<16x64xf32, #tpu.memory_space<vmem>>, vector<16x16xf32>,
    %c0_42 = arith.constant 0 : index
    %c0_43 = arith.constant 0 : index
    %88 = vector.load %arg7[%c0_42, %c0_43] : memref<16x64xf32, #tpu.memory_space<vmem>>, vector<16x64xf32>
    %c0_44 = arith.constant 0 : index
    %c0_45 = arith.constant 0 : index
    %89 = vector.load %arg3[%c0_44, %c0_45] : memref<64x64xf32, #tpu.memory_space<vmem>>, vector<64x64xf32>
    %cst_46 = arith.constant dense<0.000000e+00> : vector<16x64xf32>
    %90 = tpu.matmul %88, %89, %cst_46 {dimension_numbers = #tpu.dot_dimension_numbers<[1], [0], [0], [1], [0, 0, 1, 1], [], []>} : vector<16x64xf32>, vector<64x64xf32>, vector<16x64xf32> -> vector<16x64xf32>
    %c0_47 = arith.constant 0 : index
    %c0_48 = arith.constant 0 : index
    %91 = vector.load %arg4[%c0_47, %c0_48] : memref<1x64xf32, #tpu.memory_space<vmem>>, vector<1x64xf32>
    %92 = vector.broadcast %91 : vector<1x64xf32> to vector<16x64xf32>
    %93 = arith.addf %90, %92 : vector<16x64xf32>
    %c0_49 = arith.constant 0 : index
    %c0_50 = arith.constant 0 : index
    %c0_51 = arith.constant 0 : index
    %94 = vector.load %arg5[%c0_49, %c0_50, %c0_51] : memref<1x16x64xf32, #tpu.memory_space<vmem>>, vector<1x16x64xf32>
    %95 = vector.shape_cast %94 : vector<1x16x64xf32> to vector<16x64xf32>
    %96 = vector.shape_cast %93 : vector<16x64xf32> to vector<1x16x64xf32>
    tpu.vector_store %arg5[%c0_49, %c0_50, %c0_51], %96 {strides = array<i32>} : memref<1x16x64xf32, #tpu.memory_space<vmem>>, vector<1x16x64xf32>,
    return
  }
  func.func @transform_0(%arg0: i32) -> (i32, i32, i32) {
    %c0_i32 = arith.constant 0 : i32
    %c0_i32_0 = arith.constant 0 : i32
    %c0_i32_1 = arith.constant 0 : i32
    return %arg0, %c0_i32, %c0_i32_0 : i32, i32, i32
  }
  func.func @transform_1(%arg0: i32) -> (i32, i32) {
    %c0_i32 = arith.constant 0 : i32
    %c0_i32_0 = arith.constant 0 : i32
    %c0_i32_1 = arith.constant 0 : i32
    return %c0_i32, %c0_i32_0 : i32, i32
  }
  func.func @transform_2(%arg0: i32) -> (i32, i32) {
    %c0_i32 = arith.constant 0 : i32
    %c0_i32_0 = arith.constant 0 : i32
    %c0_i32_1 = arith.constant 0 : i32
    return %c0_i32, %c0_i32_0 : i32, i32
  }
  func.func @transform_3(%arg0: i32) -> (i32, i32) {
    %c0_i32 = arith.constant 0 : i32
    %c0_i32_0 = arith.constant 0 : i32
    %c0_i32_1 = arith.constant 0 : i32
    return %c0_i32, %c0_i32_0 : i32, i32
  }
  func.func @transform_4(%arg0: i32) -> (i32, i32, i32) {
    %c0_i32 = arith.constant 0 : i32
    %c0_i32_0 = arith.constant 0 : i32
    %c0_i32_1 = arith.constant 0 : i32
    return %arg0, %c0_i32, %c0_i32_0 : i32, i32, i32
  }
  func.func @transform_5(%arg0: i32) -> (i32, i32, i32, i32) {
    %c0_i32 = arith.constant 0 : i32
    %c0_i32_0 = arith.constant 0 : i32
    %c0_i32_1 = arith.constant 0 : i32
    %c0_i32_2 = arith.constant 0 : i32
    return %arg0, %c0_i32, %c0_i32_0, %c0_i32_1 : i32, i32, i32, i32
  }
}

</mosaic_0001>

<bundles_post_ra>
// kernel: tpu_custom_call.1
= control target key start
LH: loop header
LB: loop body
LE: loop exit
PB: predicated region body
PF: predicated region fallthrough
CT: control target
= control target key end

     0   :  { %11 = vsyncpa [#allocation4], 0  ;;  %s2544_s0 = inlined_call_operand.hbm [shape: f32[2,16,64], index: 0, kind: input, shape index: {}]   ;;  %s2545_s1 = inlined_call_operand.hbm [shape: f32[64,192], index: 1, kind: input, shape index: {}]   ;;  %s2546_s2 = inlined_call_operand.hbm [shape: f32[64,64], index: 2, kind: input, shape index: {}]   ;;  %s2547_s3 = inlined_call_operand.vmem [shape: f32[1,64], index: 3, kind: input, shape index: {}]   ;;  %s2548_s4 = inlined_call_operand.hbm [shape: f32[2,16,64], index: 4, kind: output, shape index: {0}]   ;;  %s2549_s5 = inlined_call_operand.hbm [shape: f32[2,4,16,16], index: 5, kind: output, shape index: {1}]  }
   0x1   :  { %13 = vsyncpa [#allocation4 + $0x1], 0 }
   0x2   :  { %14 = vsyncpa [#allocation7], 0 }
   0x3   :  { %15 = vsyncpa [#allocation5], 0 }
   0x4   :  { %17 = vsyncpa [#allocation5 + $0x1], 0 }
   0x5   :  { %18 = vsyncpa [#allocation11], 0 }
   0x6   :  { %20 = vsyncpa [#allocation11 + $0x1], 0  ;;  %s2130_s18 = smov 0   ;;  %s2132_s19 = smov 0  }
   0x7   :  { %s2134_s20 = smov 0   ;;  %s2136_s21 = smov 0  }
   0x8 LB: > { %s2151_s22 = sadd.s32 4294967295, %s2079_s21   ;;  %s1489_s23 = sadd.s32 4294967294, %s2079_s21   ;;  %s2079_s21 = sphi %s2136_s21, %s2571_s21   ;;  %s2075_s20 = sphi %s2134_s20, %s2570_s20   ;;  %s2071_s19 = sphi %s2132_s19, %s2569_s19   ;;  %s2067_s18 = sphi %s2130_s18, %s2568_s18  }
   0x9   : > { %p46_p0 = scmp.ne.s32.totalorder %s2071_s19, %s2067_s18  ;;  %p2550_p1 = scmp.eq.s32.totalorder %s2151_s22, 0 }
   0xa   : > { %p139_p3 = scmp.eq.s32.totalorder %s1489_s23, 1  ;;  %p1490_p5 = scmp.ge.s32.totalorder %s2079_s21, 1 }
   0xb   : > { %p2160_p4 = por %p2550_p1, %p46_p0  ;;  %p172_p7 = scmp.lt.s32.totalorder %s2079_s21, 3 }
   0xc   : > { %p2165_p6 = por %p139_p3, %p46_p0  ;;  %s2081_s27 = smov [#allocation6]  }
   0xd   : > { %s2553_s24 = scalar_select %p2160_p4, 1, 0 }
   0xe   : > { %s2554_s25 = scalar_select %p2165_p6, 1, 0 }
   0xf   : > { %p2170_p8 = pnand %p1490_p5, %p172_p7  ;;  %s184_s28 = sshll.u32 %s2081_s27, 4  ;;  %s2174_s28 = int_to_ptr.vmem [resolvable:$true] %s184_s28 }
  0x10   : > { %s2082_s30 = smov [#allocation8]   ;;  %s1891_s9 = scalar_lea.hbm %s2545_s1, 2048 }
  0x11   : > { %p1752_p9 = pneg %p2170_p8  ;;  %s197_s6 = sshll.u32 %s2082_s30, 4  ;;  %s2185_s6 = int_to_ptr.vmem [resolvable:$true] %s197_s6 }
  0x12   : > { %p1892_p12 = scmp.ne.s32.totalorder %s2545_s1, %s1891_s9  ;;  %p1898_p5 = scmp.lt.u32.totalorder %s1891_s9, %s2545_s1 }
  0x13   : > { %p2181_p11 = pnand %p1752_p9, %p2550_p1 }
  0x15   : > { %p1893_p13 = pneg %p2181_p11 }
  0x17   : > { %p1894_p0 = pnand %p1893_p13, %p1892_p12 }
  0x19   : > { %p1895_p3 = pneg %p1894_p0 }
  0x1b   : > { %p1900_p7 = pnand %p1898_p5, %p1895_p3 }
  0x1d   : > { %1903 = shalt.err (!%p1900_p7)
}
  0x1e   : > { %s1904_s14 = scalar_lea.vmem %s2174_s28, 2048  ;;  %p1912_p2 = scmp.lt.s32.totalorder %s2174_s28, %s2174_s28 }
  0x1f   : > { %p1905_p9 = scmp.ne.s32.totalorder %s2174_s28, %s1904_s14  ;;  %p1913_p12 = scmp.lt.s32.totalorder %s1904_s14, %s1904_s14 }
  0x21   : > { %p1907_p10 = pnand %p1905_p9, %p1893_p13  ;;  %p1914_p0 = por %p1913_p12, %p1912_p2 }
  0x23   : > { %p1908_p1 = pneg %p1907_p10 }
  0x25   : > { %p1915_p6 = pnand %p1914_p0, %p1908_p1 }
  0x27   : > { %1918 = shalt.err (!%p1915_p6)
}
  0x28   : > { %s2083_s15 = smov 256   ;;  %s2084_s16 = smov 16  }
  0x29   : > { %1755 = dma.hbm_to_vmem [thread:$0]  (!%p2181_p11), %s2545_s1, 2048, %s2174_s28, [#allocation7], %s2083_s15, %s2083_s15, %s2084_s16  }
  0x2a   : > { %s1919_s7 = scalar_lea.hbm %s2546_s2, 1024 }
  0x2b   : > { %p1920_p2 = scmp.ne.s32.totalorder %s2546_s2, %s1919_s7  ;;  %p1926_p10 = scmp.lt.u32.totalorder %s1919_s7, %s2546_s2 }
  0x2d   : > { %p1922_p1 = pnand %p1920_p2, %p1893_p13 }
  0x2f   : > { %p1923_p6 = pneg %p1922_p1 }
  0x31   : > { %p1928_p3 = pnand %p1926_p10, %p1923_p6 }
  0x33   : > { %1931 = shalt.err (!%p1928_p3)
}
  0x34   : > { %s1932_s28 = scalar_lea.vmem %s2185_s6, 1024  ;;  %p1940_p12 = scmp.lt.s32.totalorder %s2185_s6, %s2185_s6 }
  0x35   : > { %p1933_p5 = scmp.ne.s32.totalorder %s2185_s6, %s1932_s28  ;;  %p1941_p0 = scmp.lt.s32.totalorder %s1932_s28, %s1932_s28 }
  0x37   : > { %p1935_p7 = pnand %p1933_p5, %p1893_p13  ;;  %p1942_p2 = por %p1941_p0, %p1940_p12 }
  0x39   : > { %p1936_p9 = pneg %p1935_p7 }
  0x3b   : > { %p1943_p1 = pnand %p1942_p2, %p1936_p9 }
  0x3d   : > { %1946 = shalt.err (!%p1943_p1)
}
  0x3e   : > { %s2085_s12 = smov 128   ;;  %s2086_s13 = smov 8  }
  0x3f   : > { %1758 = dma.hbm_to_vmem [thread:$0]  (!%p2181_p11), %s2546_s2, 1024, %s2185_s6, [#allocation7], %s2085_s12, %s2085_s12, %s2086_s13  }
  0x40   : > { %s2243_s16 = sadd.s32 1, %s2079_s21   ;;  %s33_s23 = sadd.s32 1, %s2075_s20 }
  0x41   : > { %s30_s17 = ssub.s32 %s2079_s21, %s2243_s16  ;;  %p40_p6 = scmp.ne.s32.totalorder %s2075_s20, %s2071_s19 }
  0x42   : > { %p31_p13 = scmp.eq.s32.totalorder %s30_s17, 0  ;;  %p41_p10 = scmp.eq.s32.totalorder %s2079_s21, 0 }
  0x43   : > { %p2557_p5 = scmp.eq.s32.totalorder %s2151_s22, 1  ;;  %p1772_p9 = scmp.lt.s32.totalorder %s2079_s21, 2 }
  0x44   : > { %s2252_s27 = scalar_select %p31_p13, %s2075_s20, %s33_s23  }
  0x45   : > { %p42_p3 = por %p41_p10, %p40_p6  ;;  %p2256_p7 = por %p2557_p5, %p40_p6 }
  0x46   : > { %s214_s30 = sand.u32 1, %s2075_s20   ;;  %s1546_s6 = sshll.u32 %s2079_s21, 8 }
  0x47   : > { %s2558_s29 = scalar_select %p2256_p7, 1, 0 }
  0x48   : > { %s1494_s7 = sshll.u32 %s214_s30, 4  ;;  %s2266_s10 = scalar_lea.hbm %s2544_s0, %s1546_s6 }
  0x49   : > { %s218_s11 = scalar_lea.vmem [#allocation3], %s1494_s7  ;;  %p2270_p11 = pnand %p1772_p9, %p42_p3 }
  0x4a   : > { %s225_s28 = sshll.u32 %s218_s11, 4  ;;  %s2274_s15 = scalar_lea.sflag [#allocation4], %s214_s30  ;;  %s2268_s28 = int_to_ptr.vmem [resolvable:$true] %s225_s28 }
  0x4b   : > { %s1947_s17 = scalar_lea.hbm %s2266_s10, 256  ;;  %p1949_p0 = pneg %p2270_p11 }
  0x4c   : > { %p1948_p12 = scmp.ne.s32.totalorder %s2266_s10, %s1947_s17  ;;  %s1952_s6 = scalar_lea.hbm %s2544_s0, 512 }
  0x4d   : > { %p1953_p13 = scmp.lt.u32.totalorder %s2266_s10, %s2544_s0  ;;  %p1954_p6 = scmp.lt.u32.totalorder %s1952_s6, %s1947_s17 }
  0x4e   : > { %p1950_p2 = pnand %p1949_p0, %p1948_p12  ;;  %p1956_p3 = scmp.lt.u32.totalorder %s1947_s17, %s2266_s10 }
  0x4f   : > { %p1955_p10 = por %p1954_p6, %p1953_p13 }
  0x50   : > { %p1951_p1 = pneg %p1950_p2 }
  0x51   : > { %p1957_p5 = por %p1956_p3, %p1955_p10 }
  0x53   : > { %p1958_p9 = pnand %p1957_p5, %p1951_p1 }
  0x55   : > { %1961 = shalt.err (!%p1958_p9)
}
  0x56   : > { %s1962_s30 = scalar_lea.vmem %s2268_s28, 256  ;;  %s2087_s11 = smov [#allocation3]  }
  0x57   : > { %p1963_p12 = scmp.ne.s32.totalorder %s2268_s28, %s1962_s30  ;;  %s1967_s23 = sshll.u32 %s2087_s11, 4  ;;  %s1968_s23 = int_to_ptr.vmem [resolvable:$false] %s1967_s23 }
  0x58   : > { %s1969_s7 = scalar_lea.vmem %s1968_s23, 512  ;;  %p1970_p4 = scmp.lt.s32.totalorder %s2268_s28, %s1968_s23 }
  0x59   : > { %p1965_p2 = pnand %p1963_p12, %p1949_p0  ;;  %p1971_p13 = scmp.lt.s32.totalorder %s1969_s7, %s1962_s30 }
  0x5b   : > { %p1966_p7 = pneg %p1965_p2  ;;  %p1972_p6 = por %p1971_p13, %p1970_p4 }
  0x5d   : > { %p1973_p10 = pnand %p1972_p6, %p1966_p7 }
  0x5f   : > { %1976 = shalt.err (!%p1973_p10)
}
  0x60   : > { %1762 = dma.hbm_to_vmem [thread:$0]  (!%p2270_p11), %s2266_s10, 256, %s2268_s28, %s2274_s15, %s2085_s12, %s2085_s12, %s2086_s13  }
  0x61   : > { %237 = sbr.rel (%p2170_p8) target bundleno = 2659 (0xa63), region = 36  ;;  %s2308_s17 = sand.u32 (!%p2170_p8), 1, %s2071_s19  }
  0x62   : > { %s1498_s6 = sshll.u32 (!%p2170_p8), %s2308_s17, 4  ;;  %s240_s8 = scalar_lea.sflag (!%p2170_p8), [#allocation4], %s2308_s17 }
  0x63   : > { %s2314_s14 = scalar_lea.vmem (!%p2170_p8), [#allocation3], %s1498_s6  ;;  %p2560_p4 = scmp.ne.s32.totalorder (!%p2170_p8), %s2553_s24, 0 }
  0x68   : > { %2050 = dma.done.wait (%p2560_p4), %s240_s8, 256  }
  0x69   : > { %2052 = vsyncadd (%p2560_p4), %s240_s8, 4294967040  ;;  %p2561_p7 = scmp.eq.s32.totalorder %s2151_s22, 0 }
  0x6b   : > { %2054 = dma.done.wait (%p2561_p7), [#allocation7], 3072   ;;  %p2562_p8 = pmov %p2561_p7 }
  0x6c   : > { %v2088_v0 = vmov 0.0   ;;  %v286_v1 = vld [vmem:[#allocation6 + $0x8] sm:$0xff]  ;;  %v288_v2 = vld [vmem:[#allocation6 + $0x18] sm:$0xff]  ;;  %v285_v3 = vld [vmem:[#allocation6] sm:$0xff]  ;;  %vm301_vm0 = vcmask 523264   ;;  %vm393_vm1 = vcmask 130048  }
  0x6d   : > { %2056 = vsyncadd (%p2562_p8), [#allocation7], 4294964224  ;;  %372 = vmatprep.mubr.f32.mxu0 %v2088_v0  ;;  %v1666_v4 = vpack.c.bf16 %v288_v2, %v286_v1  ;;  %v287_v5 = vld [vmem:[#allocation6 + $0x10] sm:$0xff]  ;;  %v290_v6 = vld [vmem:[#allocation6 + $0x28] sm:$0xff]  ;;  %s2089_s24 = smov 64   ;;  %s2090_s26 = smov 48  }
  0x6e   : > { %v292_v7 = vld [vmem:[#allocation6 + $0x38] sm:$0xff]  ;;  %v1668_v8 = vpack.c.bf16 %v287_v5, %v285_v3  ;;  %v289_v10 = vld [vmem:[#allocation6 + $0x20] sm:$0xff]  ;;  %v291_v11 = vld [vmem:[#allocation6 + $0x30] sm:$0xff]  ;;  %s2091_s12 = smov 112   ;;  %s2092_s13 = smov 32   ;;  %vm799_vm3 = vcmask 261248  }
  0x6f   : > { %v1670_v9 = vpack.c.bf16 %v292_v7, %v290_v6  ;;  %v294_v12 = vld [vmem:[#allocation6 + $0x48] sm:$0xff]  ;;  %1667 = vmatprep.subr.bf16.mxu0 %v1666_v4  ;;  %v296_v13 = vld [vmem:[#allocation6 + $0x58] sm:$0xff]  ;;  %v1672_v14 = vpack.c.bf16 %v291_v11, %v289_v10  ;;  %v293_v16 = vld [vmem:[#allocation6 + $0x40] sm:$0xff]  ;;  %s2093_s10 = smov 96   ;;  %s1502_s28 = sshll.u32 %s2308_s17, 6  ;;  %vm1013_vm4 = vcmask 392448  }
  0x70   : > { %1669 = vmatpush1.bf16.msra.mxu0 %v1668_v8  ;;  %v1674_v15 = vpack.c.bf16 %v296_v13, %v294_v12  ;;  %v295_v17 = vld [vmem:[#allocation6 + $0x50] sm:$0xff]  ;;  %v298_v18 = vld [vmem:[#allocation6 + $0x68] sm:$0xff]  ;;  %v300_v19 = vld [vmem:[#allocation6 + $0x78] sm:$0xff]  ;;  %s2370_s15 = scalar_lea.vmem [#allocation10], %s1502_s28  ;;  %s2094_s9 = smov 16   ;;  %vm1227_vm5 = vcmask 523648  }
  0x71   : > { %1671 = vmatprep.subr.bf16.mxu0 %v1670_v9  ;;  %v1676_v20 = vpack.c.bf16 %v295_v17, %v293_v16  ;;  %v1678_v21 = vpack.c.bf16 %v300_v19, %v298_v18  ;;  %v297_v22 = vld [vmem:[#allocation6 + $0x60] sm:$0xff]  ;;  %v299_v23 = vld [vmem:[#allocation6 + $0x70] sm:$0xff]  ;;  %v284_v26 = vld [vmem:[%s2314_s14 + $0x8] sm:$0xff]  ;;  %s2095_s30 = smov 80   ;;  %s1548_s11 = sshll.u32 %s2151_s22, 10 }
  0x72   : > { %v1680_v24 = vpack.c.bf16 %v299_v23, %v297_v22  ;;  %v283_v25 = vld [vmem:[%s2314_s14] sm:$0xff]  ;;  %vm2339_vm2 = vmpackc.low %vm393_vm1, %vm393_vm1  ;;  %s1365_s23 = sshll.u32 %s2370_s15, 4  ;;  %s2453_s14 = scalar_lea.hbm %s2549_s5, %s1548_s11  ;;  %s2455_s23 = int_to_ptr.vmem [resolvable:$true] %s1365_s23 }
  0x73   : > { %p2565_p0 = scmp.ne.s32.totalorder %s2558_s29, 0 }
  0x74   : > { %1673 = vmatpush1.bf16.msra.mxu0 %v1672_v14 }
  0x75   : > { %1675 = vmatprep.subr.bf16.mxu0 %v1674_v15 }
  0x78   : > { %1677 = vmatpush1.bf16.msra.mxu0 %v1676_v20 }
  0x79   : > { %1679 = vmatprep.subr.bf16.mxu0 %v1678_v21 }
  0x7c   : > { %1681 = vmatpush1.bf16.msra.mxu0 %v1680_v24 }
  0x7f   : > { %1503 = vmatmul.mubr.msk.f32.vlgmr.msra.gmra.mrb[0].mxu0 %vm301_vm0, %v283_v25 }
  0x80   : > { %378 = vmatprep.mubr.f32.mxu0 %v2088_v0 }
  0x83   : > { %1504 = vmatmul.mubr.msk.f32.gmra.mrb[2].mxu0 %vm301_vm0, %v284_v26 }
 0x152   : > { %v374_v27 = vpop.f32.mrb[0].mxu0 }
 0x153   : > { %v376_v28 = vpop.f32.mrb[1].mxu0  ;;  %v2328_v29 = vmul.f32 0.25, %v374_v27 }
 0x155   : > { %1595 = vmatprep.mubr.msk.f32.mxu0 %vm393_vm1, %v2328_v29 }
 0x156   : > { %v380_v30 = vpop.f32.mrb[2].mxu0 }
 0x157   : > { %v382_v31 = vpop.f32.mrb[3].mxu0  ;;  %v2332_v32 = vpack.i.bf16 %v380_v30, %v374_v27  ;;  %v2347_v40 = vmul.f32 0.25, %v380_v30 }
 0x158   : > { %v1688_v33 = vpack.c.bf16 %v382_v31, %v376_v28  ;;  %v2334_v34 = vpack.i.bf16 %v382_v31, %v376_v28 }
 0x159   : > { %1825 = vrot.lane.b32.xlu0 %v2332_v32, %s2089_s24  ;;  %s1336_s24 = scalar_lea.sflag [#allocation11], %s2308_s17 }
 0x15a   : > { %1689 = vmatprep.subr.bf16.mxu1 %v1688_v33 }
 0x15b   : > { %1691 = vmatpush3.bf16.msra.mxu1 %v1688_v33 }
 0x1cb   : > { %v1826_v35 = vpop.permute.xlu0 %1825 }
 0x1cc   : > { %v1828_v36 = vunpack.i.h.bf16 %v1826_v35  ;;  %v1827_v37 = vunpack.i.l.bf16 %v1826_v35 }
 0x1ce   : > { %v1682_v39 = vpack.c.bf16 %v1828_v36, %v1827_v37 }
 0x1d0   : > { %1684 = vmatprep.subr.msk.bf16.mxu0 %vm2339_vm2, %v1682_v39 }
 0x1d1   : > { %1687 = vmatpush3.bf16.xpose.msk.msra.mxu0 %vm2339_vm2, %v1682_v39 }
 0x1d8   : > { %1596 = vmatmul.mubr.msk.f32.vlgmr.msra.gmra.mrb[4].mxu0 %vm393_vm1, %v2347_v40 }
 0x2ab   : > { %v1597_v41 = vpop.f32.mrb[4].mxu0 }
 0x2ac   : > { %v470_v42 = vpop.f32.mrb[5].mxu0  ;;  %v482_v43 = vsel %vm393_vm1, %v1597_v41, -inf }
 0x2ad   : > { %483 = vmax.xlane.f32.xlu1 %v482_v43  ;;  %v479_v44 = vsel %vm393_vm1, %v470_v42, -inf }
 0x2ae   : > { %480 = vmax.xlane.f32.xlu0 %v479_v44 }
 0x2be   : > { %1830 = vrot.lane.b32.xlu1 %v2332_v32, %s2090_s26 }
 0x2c2   : > { %586 = vrot.lane.b32.xlu1 %v2328_v29, %s2091_s12 }
 0x2c4   : > { %588 = vrot.lane.b32.xlu0 %v2347_v40, %s2091_s12 }
 0x33a   : > { %v484_v45 = vpop.xlane.xlu1 %483 }
 0x33b   : > { %v486_v46 = vsub.f32 %v1597_v41, %v484_v45  ;;  %v481_v47 = vpop.xlane.xlu0 %480 }
 0x33c   : > { %v485_v48 = vsub.f32 %v470_v42, %v481_v47 }
 0x33d   : > { %v489_v49 = vmul.f32 1.442695, %v486_v46 }
 0x33e   : > { %v487_v50 = vmul.f32 1.442695, %v485_v48  ;;  %v1831_v51 = vpop.permute.xlu1 %1830 }
 0x33f   : > { %1859 = vpow2.f32 %v489_v49  ;;  %v1833_v52 = vunpack.i.h.bf16 %v1831_v51  ;;  %v1832_v53 = vunpack.i.l.bf16 %v1831_v51  ;;  %v589_v6 = vpop.permute.xlu0 %588 }
 0x340   : > { %1861 = vpow2.f32 %v487_v50 }
 0x341   : > { %v1692_v54 = vpack.c.bf16 %v1833_v52, %v1832_v53 }
 0x342   : > { %v587_v59 = vpop.permute.xlu1 %586 }
 0x343   : > { %1694 = vmatprep.subr.msk.bf16.mxu1 %vm2339_vm2, %v1692_v54 }
 0x349   : > { %v1860_v55 = vpop.eup %1859 }
 0x34a   : > { %v494_v56 = vsel %vm393_vm1, %v1860_v55, 0.0  ;;  %v1862_v57 = vpop.eup %1861 }
 0x34b   : > { %495 = vadd.xlane.f32.xlu1 %v494_v56  ;;  %v491_v58 = vsel %vm393_vm1, %v1862_v57, 0.0 }
 0x34f   : > { %492 = vadd.xlane.f32.xlu1 %v491_v58 }
 0x360   : > { %1835 = vrot.lane.b32.xlu1 %v2332_v32, %s2092_s13 }
 0x364   : > { %802 = vrot.lane.b32.xlu1 %v2328_v29, %s2093_s10 }
 0x368   : > { %804 = vrot.lane.b32.xlu1 %v2347_v40, %s2093_s10 }
 0x3d8   : > { %v496_v60 = vpop.xlane.xlu1 %495 }
 0x3d9   : > { %1863 = vrcp.f32 %v496_v60 }
 0x3dc   : > { %v493_v61 = vpop.xlane.xlu1 %492 }
 0x3dd   : > { %1865 = vrcp.f32 %v493_v61 }
 0x3e0   : > { %v1836_v63 = vpop.permute.xlu1 %1835 }
 0x3e1   : > { %v1838_v2 = vunpack.i.h.bf16 %v1836_v63  ;;  %v1837_v3 = vunpack.i.l.bf16 %v1836_v63 }
 0x3e3   : > { %v1864_v62 = vpop.eup %1863  ;;  %v1702_v5 = vpack.c.bf16 %v1838_v2, %v1837_v3 }
 0x3e4   : > { %v500_v0 = vmul.f32 %v1864_v62, %v1860_v55  ;;  %v803_v7 = vpop.permute.xlu1 %802 }
 0x3e6   : > { %502 = vst.msk [vmem:[%s2370_s15 + $0x8] sm:$0xff] %vm393_vm1, %v500_v0 }
 0x3e7   : > { %v1866_v1 = vpop.eup %1865 }
 0x3e8   : > { %v499_v4 = vmul.f32 %v1866_v1, %v1862_v57  ;;  %v805_v8 = vpop.permute.xlu1 %804 }
 0x3ea   : > { %501 = vst.msk [vmem:[%s2370_s15] sm:$0xff] %vm393_vm1, %v499_v4  ;;  %1602 = vmatprep.mubr.msk.f32.mxu1 %vm393_vm1, %v499_v4 }
 0x3eb   : > { %1603 = vmatmul.mubr.msk.f32.vlgmr.msra.gmra.mrb[0].mxu1 %vm393_vm1, %v500_v0 }
 0x3ec   : > { %1697 = vmatpush3.bf16.xpose.msk.msra.mxu1 %vm2339_vm2, %v1692_v54  ;;  %1609 = vmatprep.mubr.msk.f32.mxu1 %vm393_vm1, %v587_v59 }
 0x3ed   : > { %1704 = vmatprep.subr.msk.bf16.mxu1 %vm2339_vm2, %v1702_v5 }
 0x3f3   : > { %1610 = vmatmul.mubr.msk.f32.vlgmr.msra.gmra.mrb[2].mxu1 %vm393_vm1, %v589_v6 }
 0x3f4   : > { %1707 = vmatpush3.bf16.xpose.msk.msra.mxu1 %vm2339_vm2, %v1702_v5  ;;  %1623 = vmatprep.mubr.msk.f32.mxu1 %vm393_vm1, %v803_v7 }
 0x3fb   : > { %1624 = vmatmul.mubr.msk.f32.vlgmr.msra.gmra.mrb[4].mxu1 %vm393_vm1, %v805_v8 }
 0x4be   : > { %v1604_v9 = vpop.f32.mrb[0].mxu1 }
 0x4bf   : > { %585 = vst.msk [vmem:[#allocation2 + $0x8] sm:$0xff] %vm393_vm1, %v1604_v9  ;;  %v575_v10 = vpop.f32.mrb[1].mxu1 }
 0x4c0   : > { %584 = vst.msk [vmem:[#allocation2] sm:$0xff] %vm393_vm1, %v575_v10 }
 0x4c6   : > { %v1611_v11 = vpop.f32.mrb[2].mxu1 }
 0x4c7   : > { %v668_v12 = vpop.f32.mrb[3].mxu1  ;;  %v680_v13 = vsel %vm393_vm1, %v1611_v11, -inf }
 0x4c8   : > { %681 = vmax.xlane.f32.xlu0 %v680_v13  ;;  %v677_v14 = vsel %vm393_vm1, %v668_v12, -inf }
 0x4c9   : > { %678 = vmax.xlane.f32.xlu1 %v677_v14 }
 0x4ce   : > { %v1625_v15 = vpop.f32.mrb[4].mxu1 }
 0x4cf   : > { %v884_v16 = vpop.f32.mrb[5].mxu1  ;;  %v896_v18 = vsel %vm393_vm1, %v1625_v15, -inf }
 0x4d0   : > { %v893_v17 = vsel %vm393_vm1, %v884_v16, -inf }
 0x4d1   : > { %894 = vmax.xlane.f32.xlu1 %v893_v17 }
 0x4d5   : > { %897 = vmax.xlane.f32.xlu1 %v896_v18 }
 0x555   : > { %v682_v19 = vpop.xlane.xlu0 %681 }
 0x556   : > { %v684_v20 = vsub.f32 %v1611_v11, %v682_v19  ;;  %v679_v21 = vpop.xlane.xlu1 %678 }
 0x557   : > { %v683_v22 = vsub.f32 %v668_v12, %v679_v21 }
 0x558   : > { %v687_v23 = vmul.f32 1.442695, %v684_v20 }
 0x559   : > { %v685_v24 = vmul.f32 1.442695, %v683_v22 }
 0x55a   : > { %1867 = vpow2.f32 %v687_v23 }
 0x55b   : > { %1869 = vpow2.f32 %v685_v24 }
 0x55e   : > { %v895_v25 = vpop.xlane.xlu1 %894 }
 0x55f   : > { %v899_v26 = vsub.f32 %v884_v16, %v895_v25 }
 0x561   : > { %v901_v27 = vmul.f32 1.442695, %v899_v26 }
 0x562   : > { %v898_v28 = vpop.xlane.xlu1 %897 }
 0x563   : > { %1871 = vpow2.f32 %v901_v27  ;;  %v900_v30 = vsub.f32 %v1625_v15, %v898_v28 }
 0x564   : > { %v1868_v31 = vpop.eup %1867 }
 0x565   : > { %v1870_v33 = vpop.eup %1869  ;;  %v903_v35 = vmul.f32 1.442695, %v900_v30  ;;  %v692_v36 = vsel %vm393_vm1, %v1868_v31, 0.0 }
 0x566   : > { %693 = vadd.xlane.f32.xlu1 %v692_v36  ;;  %v689_v37 = vsel %vm393_vm1, %v1870_v33, 0.0  ;;  %v1232_v36 = vld [vmem:[#allocation8] sm:$0xff] }
 0x567   : > { %1873 = vpow2.f32 %v903_v35  ;;  %690 = vadd.xlane.f32.xlu0 %v689_v37  ;;  %v1233_v37 = vld [vmem:[#allocation8 + $0x8] sm:$0xff] }
 0x56d   : > { %v1872_v39 = vpop.eup %1871 }
 0x56e   : > { %v905_v41 = vsel %vm393_vm1, %v1872_v39, 0.0 }
 0x56f   : > { %906 = vadd.xlane.f32.xlu0 %v905_v41  ;;  %v1722_v41 = vpack.c.bf16 %v1233_v37, %v1232_v36 }
 0x571   : > { %v1874_v42 = vpop.eup %1873 }
 0x572   : > { %v908_v43 = vsel %vm393_vm1, %v1874_v42, 0.0 }
 0x573   : > { %909 = vadd.xlane.f32.xlu1 %v908_v43 }
 0x584   : > { %1845 = vrot.lane.b32.xlu1 %v2334_v34, %s2093_s10 }
 0x585   : > { %1840 = vrot.lane.b32.xlu0 %v2334_v34, %s2091_s12  ;;  %s2096_s12 = smov [#allocation10]  }
 0x588   : > { %1850 = vrot.lane.b32.xlu1 %v2332_v32, %s2094_s9 }
 0x589   : > { %1016 = vrot.lane.b32.xlu0 %v2328_v29, %s2095_s30 }
 0x58c   : > { %1018 = vrot.lane.b32.xlu1 %v2347_v40, %s2095_s30 }
 0x5f3   : > { %v694_v44 = vpop.xlane.xlu1 %693 }
 0x5f4   : > { %1875 = vrcp.f32 %v694_v44  ;;  %v691_v45 = vpop.xlane.xlu0 %690  ;;  %v1236_v44 = vld [vmem:[#allocation8 + $0x20] sm:$0xff] }
 0x5f5   : > { %1877 = vrcp.f32 %v691_v45  ;;  %v1237_v45 = vld [vmem:[#allocation8 + $0x28] sm:$0xff] }
 0x5fc   : > { %v907_v46 = vpop.xlane.xlu0 %906 }
 0x5fd   : > { %1879 = vrcp.f32 %v907_v46  ;;  %v1730_v46 = vpack.c.bf16 %v1237_v45, %v1236_v44 }
 0x5fe   : > { %v1876_v47 = vpop.eup %1875 }
 0x5ff   : > { %v1878_v48 = vpop.eup %1877  ;;  %v698_v49 = vmul.f32 %v1876_v47, %v1868_v31  ;;  %v1238_v47 = vld [vmem:[#allocation8 + $0x30] sm:$0xff] }
 0x600   : > { %v1841_v50 = vpop.permute.xlu0 %1840  ;;  %v910_v32 = vpop.xlane.xlu1 %909  ;;  %v697_v51 = vmul.f32 %v1878_v48, %v1870_v33  ;;  %v1239_v48 = vld [vmem:[#allocation8 + $0x38] sm:$0xff] }
 0x601   : > { %1516 = vst.msk [vmem:[%s2370_s15 + $0x18] sm:$0xff] %vm393_vm1, %v698_v49  ;;  %v1843_v52 = vunpack.i.h.bf16 %v1841_v50  ;;  %v1842_v29 = vunpack.i.l.bf16 %v1841_v50  ;;  %1881 = vrcp.f32 %v910_v32 }
 0x602   : > { %1515 = vst.msk [vmem:[%s2370_s15 + $0x10] sm:$0xff] %vm393_vm1, %v697_v51  ;;  %1616 = vmatprep.mubr.msk.f32.mxu0 %vm393_vm1, %v697_v51 }
 0x603   : > { %v1698_v40 = vpack.c.bf16 %v1843_v52, %v1842_v29 }
 0x604   : > { %v1846_v53 = vpop.permute.xlu1 %1845  ;;  %v1017_v1 = vpop.permute.xlu0 %1016 }
 0x605   : > { %v1848_v54 = vunpack.i.h.bf16 %v1846_v53  ;;  %v1847_v55 = vunpack.i.l.bf16 %v1846_v53  ;;  %1699 = vmatprep.subr.bf16.mxu0 %v1698_v40 }
 0x606   : > { %1701 = vmatpush3.bf16.msra.mxu0 %v1698_v40 }
 0x607   : > { %v1880_v56 = vpop.eup %1879  ;;  %v1708_v57 = vpack.c.bf16 %v1848_v54, %v1847_v55 }
 0x608   : > { %v1851_v58 = vpop.permute.xlu1 %1850  ;;  %v913_v59 = vmul.f32 %v1880_v56, %v1872_v39  ;;  %v1234_v39 = vld [vmem:[#allocation8 + $0x10] sm:$0xff] }
 0x609   : > { %v1853_v60 = vunpack.i.h.bf16 %v1851_v58  ;;  %v1852_v61 = vunpack.i.l.bf16 %v1851_v58  ;;  %1617 = vmatmul.mubr.msk.f32.vlgmr.msra.gmra.mrb[6].mxu0 %vm393_vm1, %v698_v49  ;;  %1709 = vmatprep.subr.bf16.mxu0 %v1708_v57  ;;  %v1734_v49 = vpack.c.bf16 %v1239_v48, %v1238_v47 }
 0x60a   : > { %1711 = vmatpush3.bf16.msra.mxu0 %v1708_v57  ;;  %1523 = vst.msk [vmem:[%s2370_s15 + $0x20] sm:$0xff] %vm393_vm1, %v913_v59  ;;  %1630 = vmatprep.mubr.msk.f32.mxu0 %vm393_vm1, %v913_v59 }
 0x60b   : > { %v1882_v62 = vpop.eup %1881  ;;  %v1712_v63 = vpack.c.bf16 %v1853_v60, %v1852_v61 }
 0x60c   : > { %v914_v0 = vmul.f32 %v1882_v62, %v1874_v42  ;;  %v1019_v2 = vpop.permute.xlu1 %1018  ;;  %v1235_v42 = vld [vmem:[#allocation8 + $0x18] sm:$0xff] }
 0x60d   : > { %1714 = vmatprep.subr.msk.bf16.mxu0 %vm2339_vm2, %v1712_v63  ;;  %v1726_v43 = vpack.c.bf16 %v1235_v42, %v1234_v39 }
 0x60e   : > { %1524 = vst.msk [vmem:[%s2370_s15 + $0x28] sm:$0xff] %vm393_vm1, %v914_v0  ;;  %1631 = vmatmul.mubr.msk.f32.vlgmr.msra.gmra.mrb[8].mxu0 %vm393_vm1, %v914_v0 }
 0x60f   : > { %1637 = vmatprep.mubr.msk.f32.mxu0 %vm393_vm1, %v1017_v1 }
 0x613   : > { %1717 = vmatpush3.bf16.xpose.msk.msra.mxu0 %vm2339_vm2, %v1712_v63 }
 0x61a   : > { %1638 = vmatmul.mubr.msk.f32.vlgmr.msra.gmra.mrb[10].mxu0 %vm393_vm1, %v1019_v2 }
 0x6dc   : > { %v1618_v3 = vpop.f32.mrb[6].mxu0 }
 0x6dd   : > { %v782_v4 = vpop.f32.mrb[7].mxu0 }
 0x6e1   : > { %v1632_v5 = vpop.f32.mrb[8].mxu0 }
 0x6e2   : > { %v996_v6 = vpop.f32.mrb[9].mxu0 }
 0x6ed   : > { %v1639_v7 = vpop.f32.mrb[10].mxu0 }
 0x6ee   : > { %v1098_v8 = vpop.f32.mrb[11].mxu0  ;;  %v1110_v9 = vsel %vm393_vm1, %v1639_v7, -inf }
 0x6ef   : > { %1111 = vmax.xlane.f32.xlu1 %v1110_v9  ;;  %v1107_v10 = vsel %vm393_vm1, %v1098_v8, -inf }
 0x6f0   : > { %1108 = vmax.xlane.f32.xlu0 %v1107_v10 }
 0x700   : > { %1855 = vrot.lane.b32.xlu1 %v2334_v34, %s2095_s30 }
 0x704   : > { %795 = vrot.lane.b32.xlu1 %v1618_v3, %s2094_s9 }
 0x708   : > { %1007 = vrot.lane.b32.xlu1 %v996_v6, %s2092_s13 }
 0x77c   : > { %v1112_v38 = vpop.xlane.xlu1 %1111 }
 0x77d   : > { %v1114_v11 = vsub.f32 %v1639_v7, %v1112_v38  ;;  %v1109_v12 = vpop.xlane.xlu0 %1108 }
 0x77e   : > { %v1113_v13 = vsub.f32 %v1098_v8, %v1109_v12 }
 0x77f   : > { %v1117_v14 = vmul.f32 1.442695, %v1114_v11 }
 0x780   : > { %v1115_v15 = vmul.f32 1.442695, %v1113_v13  ;;  %v1856_v16 = vpop.permute.xlu1 %1855 }
 0x781   : > { %v1858_v17 = vunpack.i.h.bf16 %v1856_v16  ;;  %v1857_v18 = vunpack.i.l.bf16 %v1856_v16 }
 0x782   : > { %1883 = vpow2.f32 %v1115_v15 }
 0x783   : > { %v1718_v19 = vpack.c.bf16 %v1858_v17, %v1857_v18  ;;  %1885 = vpow2.f32 %v1117_v14 }
 0x784   : > { %v796_v20 = vpop.permute.xlu1 %795 }
 0x785   : > { %801 = vst.msk [vmem:[#allocation2 + $0x8] sm:$0xff] %vm799_vm3, %v796_v20  ;;  %1719 = vmatprep.subr.bf16.mxu1 %v1718_v19 }
 0x786   : > { %1721 = vmatpush3.bf16.msra.mxu1 %v1718_v19 }
 0x787   : > { %1723 = vmatprep.subr.bf16.mxu1 %v1722_v41 }
 0x788   : > { %v1008_v27 = vpop.permute.xlu1 %1007 }
 0x78c   : > { %v1884_v34 = vpop.eup %1883 }
 0x78d   : > { %v1119_v21 = vsel %vm393_vm1, %v1884_v34, 0.0  ;;  %v1886_v22 = vpop.eup %1885 }
 0x78e   : > { %1120 = vadd.xlane.f32.xlu0 %v1119_v21  ;;  %v1122_v23 = vsel %vm393_vm1, %v1886_v22, 0.0 }
 0x792   : > { %1123 = vadd.xlane.f32.xlu0 %v1122_v23 }
 0x7a8   : > { %793 = vrot.lane.b32.xlu0 %v782_v4, %s2094_s9 }
 0x7ac   : > { %1009 = vrot.lane.b32.xlu0 %v1632_v5, %s2092_s13  ;;  %s1981_s13 = sshll.u32 %s2096_s12, 4  ;;  %s1982_s13 = int_to_ptr.vmem [resolvable:$false] %s1981_s13 }
 0x7ad   : > { %s1983_s10 = scalar_lea.vmem %s1982_s13, 2048  ;;  %p1984_p5 = scmp.lt.s32.totalorder %s2455_s23, %s1982_s13 }
 0x81b   : > { %v1121_v24 = vpop.xlane.xlu0 %1120 }
 0x81c   : > { %1887 = vrcp.f32 %v1121_v24 }
 0x81f   : > { %v1124_v25 = vpop.xlane.xlu0 %1123 }
 0x820   : > { %1889 = vrcp.f32 %v1124_v25 }
 0x823   : > { %v794_v26 = vpop.permute.xlu0 %793 }
 0x824   : > { %800 = vst.msk [vmem:[#allocation2] sm:$0xff] %vm799_vm3, %v794_v26 }
 0x825   : > { %1014 = vst.msk [vmem:[#allocation2] sm:$0xff] %vm1013_vm4, %v1008_v27 }
 0x826   : > { %v1888_v28 = vpop.eup %1887 }
 0x827   : > { %v1010_v30 = vpop.permute.xlu0 %1009  ;;  %v1127_v31 = vmul.f32 %v1888_v28, %v1884_v34 }
 0x828   : > { %1015 = vst.msk [vmem:[#allocation2 + $0x8] sm:$0xff] %vm1013_vm4, %v1010_v30 }
 0x829   : > { %1531 = vst.msk [vmem:[%s2370_s15 + $0x30] sm:$0xff] %vm393_vm1, %v1127_v31  ;;  %1644 = vmatprep.mubr.msk.f32.mxu1 %vm393_vm1, %v1127_v31 }
 0x82a   : > { %v1890_v33 = vpop.eup %1889 }
 0x82b   : > { %v1128_v35 = vmul.f32 %v1890_v33, %v1886_v22 }
 0x82d   : > { %1532 = vst.msk [vmem:[%s2370_s15 + $0x38] sm:$0xff] %vm393_vm1, %v1128_v35  ;;  %1645 = vmatmul.mubr.msk.f32.vlgmr.msra.gmra.mrb[6].mxu1 %vm393_vm1, %v1128_v35 }
 0x82e   : > { %1725 = vmatpush3.bf16.msra.mxu1 %v1722_v41 }
 0x82f   : > { %1727 = vmatprep.subr.bf16.mxu1 %v1726_v43 }
 0x832   : > { %1729 = vmatpush3.bf16.msra.mxu1 %v1726_v43 }
 0x833   : > { %1731 = vmatprep.subr.bf16.mxu1 %v1730_v46 }
 0x836   : > { %1733 = vmatpush3.bf16.msra.mxu1 %v1730_v46 }
 0x837   : > { %1735 = vmatprep.subr.bf16.mxu1 %v1734_v49 }
 0x83a   : > { %1737 = vmatpush3.bf16.msra.mxu1 %v1734_v49 }
 0x900   : > { %v1646_v50 = vpop.f32.mrb[6].mxu1 }
 0x901   : > { %1223 = vrot.lane.b32.xlu0 %v1646_v50, %s2090_s26  ;;  %v1210_v32 = vpop.f32.mrb[7].mxu1 }
 0x902   : > { %1221 = vrot.lane.b32.xlu1 %v1210_v32, %s2090_s26  ;;  %s1977_s26 = scalar_lea.vmem %s2455_s23, 1024 }
 0x903   : > { %p1978_p11 = scmp.ne.s32.totalorder %s2455_s23, %s1977_s26  ;;  %p1985_p9 = scmp.lt.s32.totalorder %s1983_s10, %s1977_s26 }
 0x905   : > { %p1979_p1 = pnand %p1978_p11, %p2565_p0  ;;  %p1986_p12 = por %p1985_p9, %p1984_p5 }
 0x907   : > { %p1980_p3 = pneg %p1979_p1 }
 0x909   : > { %p1987_p2 = pnand %p1986_p12, %p1980_p3 }
 0x973   : > { %v1224_v51 = vpop.permute.xlu0 %1223 }
 0x974   : > { %1229 = vst.msk [vmem:[#allocation2 + $0x8] sm:$0xff] %vm1227_vm5, %v1224_v51  ;;  %v1222_v52 = vpop.permute.xlu1 %1221 }
 0x975   : > { %1228 = vst.msk [vmem:[#allocation2] sm:$0xff] %vm1227_vm5, %v1222_v52 }
 0x97b   : > { %v1231_v40 = vld [vmem:[#allocation2 + $0x8] sm:$0xff] }
 0x97c   : > { %v1230_v29 = vld [vmem:[#allocation2] sm:$0xff] }
 0x97d   : > { %1663 = vmatprep.mubr.msk.f32.mxu1 %vm301_vm0, %v1230_v29 }
 0x97e   : > { %1664 = vmatmul.mubr.msk.f32.vlgmr.msra.gmra.mrb[8].mxu1 %vm301_vm0, %v1231_v40 }
 0x97f   : > { %1990 = shalt.err (!%p1987_p2)
}
 0x980   : > { %s1991_s28 = scalar_lea.hbm %s2453_s14, 1024  ;;  %s1995_s30 = scalar_lea.hbm %s2549_s5, 2048 }
 0x981   : > { %p1992_p13 = scmp.ne.s32.totalorder %s2453_s14, %s1991_s28  ;;  %p1996_p4 = scmp.lt.u32.totalorder %s2453_s14, %s2549_s5 }
 0x982   : > { %p1997_p7 = scmp.lt.u32.totalorder %s1995_s30, %s1991_s28  ;;  %p1999_p11 = scmp.lt.u32.totalorder %s1991_s28, %s2453_s14 }
 0x983   : > { %p1993_p6 = pnand %p1992_p13, %p2565_p0 }
 0x984   : > { %p1998_p8 = por %p1997_p7, %p1996_p4 }
 0x985   : > { %p1994_p10 = pneg %p1993_p6 }
 0x986   : > { %p2000_p1 = por %p1999_p11, %p1998_p8 }
 0x988   : > { %p2001_p3 = pnand %p2000_p1, %p1994_p10 }
 0x98a   : > { %2004 = shalt.err (!%p2001_p3)
}
 0x98b   : > { %s2097_s8 = smov 128   ;;  %s2098_s26 = smov 8   ;;  %v1535_v53 = vld [vmem:[%s2547_s3] ss:$0 sm:$0xff] }
 0x98c   : > { %1749 = dma.vmem_to_hbm [thread:$0]  (%p2565_p0), %s2455_s23, 1024, %s2453_s14, %s1336_s24, %s2097_s8, %s2097_s8, %s2098_s26  }
 0x98d   : > { %s275_s10 = scalar_lea.vmem [#allocation9], %s1498_s6  ;;  %s1547_s15 = sshll.u32 %s2151_s22, 8 }
 0x98e   : > { %s1349_s28 = sshll.u32 %s275_s10, 4  ;;  %s2495_s14 = scalar_lea.hbm %s2548_s4, %s1547_s15  ;;  %s2490_s28 = int_to_ptr.vmem [resolvable:$true] %s1349_s28 }
 0x98f   : > { %s1331_s6 = scalar_lea.sflag [#allocation5], %s2308_s17  ;;  %s2005_s22 = scalar_lea.vmem %s2490_s28, 256 }
 0x990   : > { %p2006_p5 = scmp.ne.s32.totalorder %s2490_s28, %s2005_s22  ;;  %s2099_s24 = smov [#allocation9]  }
 0x991   : > { %s2009_s30 = sshll.u32 %s2099_s24, 4  ;;  %s2010_s30 = int_to_ptr.vmem [resolvable:$false] %s2009_s30 }
 0x992   : > { %p2007_p9 = pnand %p2006_p5, %p2565_p0  ;;  %s2011_s11 = scalar_lea.vmem %s2010_s30, 512 }
 0x993   : > { %p2012_p2 = scmp.lt.s32.totalorder %s2490_s28, %s2010_s30  ;;  %p2013_p13 = scmp.lt.s32.totalorder %s2011_s11, %s2005_s22 }
 0x994   : > { %p2008_p12 = pneg %p2007_p9 }
 0x995   : > { %p2014_p6 = por %p2013_p13, %p2012_p2 }
 0x997   : > { %p2015_p10 = pnand %p2014_p6, %p2008_p12 }
 0xa51   : > { %v1665_v54 = vpop.f32.mrb[8].mxu1 }
 0xa52   : > { %v1325_v55 = vadd.f32 %v1665_v54, %v1535_v53  ;;  %v1319_v56 = vpop.f32.mrb[9].mxu1 }
 0xa53   : > { %v1320_v57 = vadd.f32 %v1535_v53, %v1319_v56 }
 0xa54   : > { %1329 = vst.msk [vmem:[%s275_s10 + $0x8] sm:$0xff] %vm301_vm0, %v1325_v55 }
 0xa55   : > { %1328 = vst.msk [vmem:[%s275_s10] sm:$0xff] %vm301_vm0, %v1320_v57 }
 0xa56   : > { %2018 = shalt.err (!%p2015_p10)
}
 0xa57   : > { %s2019_s7 = scalar_lea.hbm %s2495_s14, 256  ;;  %s2023_s10 = scalar_lea.hbm %s2548_s4, 512 }
 0xa58   : > { %p2020_p4 = scmp.ne.s32.totalorder %s2495_s14, %s2019_s7  ;;  %p2024_p11 = scmp.lt.u32.totalorder %s2495_s14, %s2548_s4 }
 0xa59   : > { %p2025_p1 = scmp.lt.u32.totalorder %s2023_s10, %s2019_s7  ;;  %p2027_p5 = scmp.lt.u32.totalorder %s2019_s7, %s2495_s14 }
 0xa5a   : > { %p2021_p7 = pnand %p2020_p4, %p2565_p0 }
 0xa5b   : > { %p2026_p3 = por %p2025_p1, %p2024_p11 }
 0xa5c   : > { %p2022_p8 = pneg %p2021_p7 }
 0xa5d   : > { %p2028_p9 = por %p2027_p5, %p2026_p3 }
 0xa5f   : > { %p2029_p12 = pnand %p2028_p9, %p2022_p8 }
 0xa61   : > { %2032 = shalt.err (!%p2029_p12)
}
 0xa62   : > { %1748 = dma.vmem_to_hbm [thread:$0]  (%p2565_p0), %s2490_s28, 256, %s2495_s14, %s1331_s6, %s2097_s8, %s2097_s8, %s2098_s26  }
 0xa63 PF: > { %s1380_s23 = sand.u32 1, %s2067_s18   ;;  %p2566_p2 = scmp.ne.s32.totalorder %s2554_s25, 0 }
 0xa64   : > { %p2567_p13 = scmp.ge.s32.totalorder %s2079_s21, 2  ;;  %s1381_s22 = scalar_lea.sflag [#allocation5], %s1380_s23 }
 0xa66   : > { %p1764_p6 = pnand %p2567_p13, %p2566_p2 }
 0xa68   : > { %2058 = dma.done.wait (!%p1764_p6), %s1381_s22, 256  }
 0xa69   : > { %2060 = vsyncadd (!%p1764_p6), %s1381_s22, 4294967040  ;;  %s1390_s29 = scalar_lea.sflag [#allocation11], %s1380_s23 }
 0xa6a   : > { %2062 = dma.done.wait (!%p1764_p6), %s1390_s29, 1024  }
 0xa6b   : > { %2064 = vsyncadd (!%p1764_p6), %s1390_s29, 4294966272  ;;  %p23_p0 = scmp.ge.s32.totalorder %s2243_s16, 4   ;;  %s2568_s18 = smov %s2071_s19 }
 0xa6c   : > { %s2569_s19 = smov %s2075_s20  ;;  %s2570_s20 = smov %s2252_s27 }
 0xa6d   : > { %s2571_s21 = smov %s2243_s16  ;;  %25 = sbr.rel (!%p23_p0) target bundleno = 8 (0x8), region = 109 }
 0xa74   :  { %1395 = vsyncpa [#allocation4], 1 }
 0xa75   :  { %1397 = vsyncpa [#allocation4 + $0x1], 1 }
 0xa76   :  { %1398 = vsyncpa [#allocation7], 1 }
 0xa77   :  { %1399 = vsyncpa [#allocation5], 1 }
 0xa78   :  { %1401 = vsyncpa [#allocation5 + $0x1], 1 }
 0xa79   :  { %1402 = vsyncpa [#allocation11], 1 }
 0xa7a   :  { %1404 = vsyncpa [#allocation11 + $0x1], 1 }

</bundles_post_ra>
